<compile_context>
chip_gen: v6e
topology: v6e:2x2x1
jax: 0.10.0
libtpu: 0.0.40
codegen_flags: <defaults>
</compile_context>

<pallas_src>
import random

import numpy as np
import jax
import jax.numpy as jnp
from jax.experimental import pallas as pl
from jax.experimental.pallas import tpu as pltpu


# ---------------------------------------------------------------------------
# Pallas kernel: tiled (mask @ embed), accumulate in out_ref, scale at the end
# ---------------------------------------------------------------------------
def mean_agg_kernel(mask_ref, emb_ref, inv_ref, out_ref):
    k = pl.program_id(2)

    @pl.when(k == 0)
    def _init():
        out_ref[...] = jnp.zeros_like(out_ref)

    # int8 {0,1} mask -> bf16 (VPU, hidden under the DMA bound), then MXU.
    m = mask_ref[...].astype(jnp.bfloat16)
    out_ref[...] += jnp.dot(m, emb_ref[...], preferred_element_type=jnp.float32)

    @pl.when(k == pl.num_programs(2) - 1)
    def _finalize():
        out_ref[...] *= inv_ref[...]          # (tb,1) broadcasts over (tb,td)


def mean_aggregate_pallas(mask_i8, embed_bf16, inv_counts, *, tb, tu, td):
    """mask_i8: (B_pad,U_pad) int8, embed_bf16: (U_pad,D_pad) bf16,
    inv_counts: (B_pad,1) f32 (exact 1/len(samp_neigh))."""
    B, U = mask_i8.shape
    U2, D = embed_bf16.shape
    assert U == U2
    assert B % tb == 0 and U % tu == 0 and D % td == 0

    grid = (B // tb, D // td, U // tu)        # reduction (U) axis last

    return pl.pallas_call(
        mean_agg_kernel,
        out_shape=jax.ShapeDtypeStruct((B, D), jnp.float32),
        grid_spec=pltpu.PrefetchScalarGridSpec(
            num_scalar_prefetch=0,
            grid=grid,
            in_specs=[
                pl.BlockSpec((tb, tu), lambda i, j, k: (i, k)),   # int8 mask
                pl.BlockSpec((tu, td), lambda i, j, k: (k, j)),   # bf16 embed
                pl.BlockSpec((tb, 1), lambda i, j, k: (i, 0)),    # 1/count
            ],
            out_specs=pl.BlockSpec((tb, td), lambda i, j, k: (i, j)),
        ),
        compiler_params=pltpu.CompilerParams(
            dimension_semantics=("parallel", "parallel", "arbitrary"),
            vmem_limit_bytes=48 * 1024 * 1024,
        ),
    )(mask_i8, embed_bf16, inv_counts)


# ---------------------------------------------------------------------------
# Tile selection (VMEM-budgeted, megacore-aware)
# ---------------------------------------------------------------------------
def _round_up(x, m):
    return ((x + m - 1) // m) * m


def _num_tensorcores():
    try:
        kind = jax.devices()[0].device_kind.lower()
        if "v7" in kind:
            return 2
    except Exception:
        pass
    return 1


def _choose_tiles(B, U, D, num_cores=1,
                  tb_pref=512, tu_pref=1024, td_cap=2048,
                  vmem_budget=24 * 1024 * 1024):
    # Feature tile: full padded D when possible (single read of the mask
    # stream); lane granule 128.
    td = min(_round_up(max(D, 1), 128), td_cap)

    # Batch tile: granule 32 (int8 sublane packing).
    tb = min(_round_up(max(B, 1), 32), tb_pref)
    # v7x megacore: keep >= 2 blocks on the "parallel" batch axis for mid/large B.
    if num_cores >= 2 and _round_up(B, 32) >= 512:
        tb = min(tb, max(256, _round_up(_round_up(B, 32) // 2, 32)))

    # Streamed reduction tile over unique neighbors.
    tu = min(_round_up(max(U, 1), 128), tu_pref)

    # Double-buffered working set (auto-pipelined): shrink until it fits.
    def usage(tb_, tu_, td_):
        return (2 * tb_ * tu_ * 1        # int8 mask tiles
                + 2 * tu_ * td_ * 2      # bf16 embed tiles
                + 2 * tb_ * td_ * 4      # f32 out tiles (accumulator-resident)
                + 2 * tb_ * 4)           # inverse counts
    while usage(tb, tu, td) > vmem_budget and tu > 128:
        tu = max(128, tu // 2)
    while usage(tb, tu, td) > vmem_budget and tb > 32:
        tb = max(32, tb // 2)
    while usage(tb, tu, td) > vmem_budget and td > 128:
        td = max(128, td // 2)

    B_pad = _round_up(B, tb)
    U_pad = _round_up(U, tu)
    D_pad = _round_up(D, td)
    return tb, tu, td, B_pad, U_pad, D_pad


# ---------------------------------------------------------------------------
# Host-side glue mirroring MeanAggregator.forward
# ---------------------------------------------------------------------------
def mean_aggregator_forward(nodes, to_neighs, feature_table, num_sample=10,
                            gcn=False, rng=None):
    """Python glue mirroring MeanAggregator.forward; the matmul runs in Pallas."""
    if rng is None:
        rng = random.Random(0)

    # --- neighbor sampling (host-side, same semantics as the torch module) ---
    if num_sample is not None:
        samp_neighs = [
            set(rng.sample(sorted(to_neigh), num_sample))
            if len(to_neigh) >= num_sample else set(to_neigh)
            for to_neigh in to_neighs
        ]
    else:
        samp_neighs = [set(n) for n in to_neighs]
    if gcn:
        samp_neighs = [samp_neigh | {nodes[i]}
                       for i, samp_neigh in enumerate(samp_neighs)]

    unique_nodes_list = sorted(set.union(*samp_neighs))
    unique_nodes = {n: i for i, n in enumerate(unique_nodes_list)}

    B = len(samp_neighs)
    U = len(unique_nodes_list)
    D = int(feature_table.shape[1])

    tb, tu, td, B_pad, U_pad, D_pad = _choose_tiles(
        B, U, D, num_cores=_num_tensorcores())

    # 0/1 membership mask as int8 (exact; zero padding is inert in the matmul)
    col = np.array([unique_nodes[n] for sn in samp_neighs for n in sn],
                   dtype=np.int32)
    row = np.array([i for i, sn in enumerate(samp_neighs) for _ in sn],
                   dtype=np.int32)
    mask_np = np.zeros((B_pad, U_pad), dtype=np.int8)
    if col.size:
        mask_np[row, col] = 1
    mask = jnp.asarray(mask_np)

    # exact host-precomputed inverse counts; padded / empty rows get 1.0 so
    # they produce 0 (instead of torch's NaN) and are sliced off below.
    inv_np = np.ones((B_pad, 1), dtype=np.float32)
    inv_np[:B, 0] = 1.0 / np.maximum(
        np.array([len(sn) for sn in samp_neighs], dtype=np.float32), 1.0)
    inv_counts = jnp.asarray(inv_np)

    # features(LongTensor(unique_nodes_list)) -> embedding-table gather (glue)
    embed = jnp.zeros((U_pad, D_pad), dtype=jnp.bfloat16)
    gathered = feature_table[jnp.asarray(unique_nodes_list, dtype=jnp.int32)]
    embed = embed.at[:U, :D].set(gathered.astype(jnp.bfloat16))

    to_feats = mean_aggregate_pallas(mask, embed, inv_counts,
                                     tb=tb, tu=tu, td=td)
    return to_feats[:B, :D]                                   # (B, D) f32


# ---------------------------------------------------------------------------
if __name__ == "__main__":
    # deterministic synthetic graph + embedding table (small shapes)
    num_total_nodes = 32
    feat_dim = 32
    batch = 8
    num_sample = 5

    key = jax.random.PRNGKey(0)
    feature_table = jax.random.normal(key, (num_total_nodes, feat_dim),
                                      dtype=jnp.float32)

    rng = random.Random(0)
    nodes = list(range(batch))
    to_neighs = []
    for i in range(batch):
        deg = rng.randint(3, 9)
        neighs = set(rng.sample(range(num_total_nodes), deg))
        neighs.discard(i)
        if not neighs:
            neighs = {(i + 1) % num_total_nodes}
        to_neighs.append(neighs)

    out = mean_aggregator_forward(nodes, to_neighs, feature_table,
                                  num_sample=num_sample, gcn=False,
                                  rng=random.Random(1))
    out = jax.block_until_ready(out)

    # ----- plain-JAX / numpy reference of the same forward (f32) -----
    rng_ref = random.Random(1)
    samp_ref = [set(rng_ref.sample(sorted(tn), num_sample))
                if len(tn) >= num_sample else set(tn) for tn in to_neighs]
    uniq_ref = sorted(set.union(*samp_ref))
    idx_ref = {n: i for i, n in enumerate(uniq_ref)}
    mask_ref = np.zeros((batch, len(uniq_ref)), dtype=np.float32)
    for i, sn in enumerate(samp_ref):
        for n in sn:
            mask_ref[i, idx_ref[n]] = 1.0
    mask_ref = mask_ref / np.maximum(mask_ref.sum(1, keepdims=True), 1.0)
    emb_ref = np.asarray(feature_table)[np.asarray(uniq_ref, dtype=np.int32)]
    ref = mask_ref @ emb_ref

    assert out.shape == (batch, feat_dim)
    assert bool(jnp.all(jnp.isfinite(out)))
    np.testing.assert_allclose(np.asarray(out), ref, rtol=2e-2, atol=2e-2)

    print("KERNEL_OK")
</pallas_src>

<mosaic_0001>
module attributes {stable_mosaic.version = 11 : i64} {
  func.func @mean_agg_kernel(%arg0: i32, %arg1: i32, %arg2: i32, %arg3: memref<32x128xi8, #tpu.memory_space<vmem>>, %arg4: memref<128x128xbf16, #tpu.memory_space<vmem>>, %arg5: memref<32x1xf32, #tpu.memory_space<vmem>>, %arg6: memref<32x128xf32, #tpu.memory_space<vmem>>) attributes {dimension_semantics = [#tpu.dimension_semantics<parallel>, #tpu.dimension_semantics<parallel>, #tpu.dimension_semantics<arbitrary>], iteration_bounds = array<i64: 1, 1, 1>, scalar_prefetch = 0 : i64, scratch_operands = 0 : i64, tpu.core_type = #tpu.core_type<tc>, window_params = [{transform_indices = @transform_0, window_bounds = array<i64: 32, 128>}, {transform_indices = @transform_1, window_bounds = array<i64: 128, 128>}, {transform_indices = @transform_2, window_bounds = array<i64: 32, 1>}, {transform_indices = @transform_3, window_bounds = array<i64: 32, 128>}]} {
    %c0_i32 = arith.constant 0 : i32
    %0 = arith.cmpi eq, %arg2, %c0_i32 : i32
    %1 = arith.extui %0 : i1 to i32
    %c0_i32_0 = arith.constant 0 : i32
    %2 = arith.cmpi ne, %1, %c0_i32_0 : i32
    scf.if %2 {
      %cst_10 = arith.constant 0.000000e+00 : f32
      %13 = vector.broadcast %cst_10 : f32 to vector<32x128xf32>
      %c0_11 = arith.constant 0 : index
      %c0_12 = arith.constant 0 : index
      %14 = vector.load %arg6[%c0_11, %c0_12] : memref<32x128xf32, #tpu.memory_space<vmem>>, vector<32x128xf32>
      tpu.vector_store %arg6[%c0_11, %c0_12], %13 {strides = array<i32>} : memref<32x128xf32, #tpu.memory_space<vmem>>, vector<32x128xf32>,
    } else {
    }
    %c0 = arith.constant 0 : index
    %c0_1 = arith.constant 0 : index
    %3 = vector.load %arg3[%c0, %c0_1] : memref<32x128xi8, #tpu.memory_space<vmem>>, vector<32x128xi8>
    %4 = arith.sitofp %3 : vector<32x128xi8> to vector<32x128xbf16>
    %c0_2 = arith.constant 0 : index
    %c0_3 = arith.constant 0 : index
    %5 = vector.load %arg6[%c0_2, %c0_3] : memref<32x128xf32, #tpu.memory_space<vmem>>, vector<32x128xf32>
    %c0_4 = arith.constant 0 : index
    %c0_5 = arith.constant 0 : index
    %6 = vector.load %arg4[%c0_4, %c0_5] : memref<128x128xbf16, #tpu.memory_space<vmem>>, vector<128x128xbf16>
    %cst = arith.constant dense<0.000000e+00> : vector<32x128xf32>
    %7 = tpu.matmul %4, %6, %cst {dimension_numbers = #tpu.dot_dimension_numbers<[1], [0], [0], [1], [0, 0, 1, 1], [], []>} : vector<32x128xbf16>, vector<128x128xbf16>, vector<32x128xf32> -> vector<32x128xf32>
    %8 = arith.addf %5, %7 : vector<32x128xf32>
    %c0_6 = arith.constant 0 : index
    %c0_7 = arith.constant 0 : index
    %9 = vector.load %arg6[%c0_6, %c0_7] : memref<32x128xf32, #tpu.memory_space<vmem>>, vector<32x128xf32>
    tpu.vector_store %arg6[%c0_6, %c0_7], %8 {strides = array<i32>} : memref<32x128xf32, #tpu.memory_space<vmem>>, vector<32x128xf32>,
    %c0_i32_8 = arith.constant 0 : i32
    %10 = arith.cmpi eq, %arg2, %c0_i32_8 : i32
    %11 = arith.extui %10 : i1 to i32
    %c0_i32_9 = arith.constant 0 : i32
    %12 = arith.cmpi ne, %11, %c0_i32_9 : i32
    scf.if %12 {
      %c0_10 = arith.constant 0 : index
      %c0_11 = arith.constant 0 : index
      %13 = vector.load %arg6[%c0_10, %c0_11] : memref<32x128xf32, #tpu.memory_space<vmem>>, vector<32x128xf32>
      %c0_12 = arith.constant 0 : index
      %c0_13 = arith.constant 0 : index
      %14 = vector.load %arg5[%c0_12, %c0_13] : memref<32x1xf32, #tpu.memory_space<vmem>>, vector<32x1xf32>
      %15 = vector.broadcast %14 : vector<32x1xf32> to vector<32x128xf32>
      %16 = arith.mulf %13, %15 : vector<32x128xf32>
      %c0_14 = arith.constant 0 : index
      %c0_15 = arith.constant 0 : index
      %17 = vector.load %arg6[%c0_14, %c0_15] : memref<32x128xf32, #tpu.memory_space<vmem>>, vector<32x128xf32>
      tpu.vector_store %arg6[%c0_14, %c0_15], %16 {strides = array<i32>} : memref<32x128xf32, #tpu.memory_space<vmem>>, vector<32x128xf32>,
    } else {
    }
    return
  }
  func.func @transform_0(%arg0: i32, %arg1: i32, %arg2: i32) -> (i32, i32) {
    %c0_i32 = arith.constant 0 : i32
    return %arg0, %arg2 : i32, i32
  }
  func.func @transform_1(%arg0: i32, %arg1: i32, %arg2: i32) -> (i32, i32) {
    %c0_i32 = arith.constant 0 : i32
    return %arg2, %arg1 : i32, i32
  }
  func.func @transform_2(%arg0: i32, %arg1: i32, %arg2: i32) -> (i32, i32) {
    %c0_i32 = arith.constant 0 : i32
    %c0_i32_0 = arith.constant 0 : i32
    return %arg0, %c0_i32 : i32, i32
  }
  func.func @transform_3(%arg0: i32, %arg1: i32, %arg2: i32) -> (i32, i32) {
    %c0_i32 = arith.constant 0 : i32
    return %arg0, %arg1 : i32, i32
  }
}

</mosaic_0001>

<bundles_post_ra>
// kernel: tpu_custom_call.1
= control target key start
LH: loop header
LB: loop body
LE: loop exit
PB: predicated region body
PF: predicated region fallthrough
CT: control target
= control target key end

     0   :  { %8 = vsyncpa [#allocation3], 0  ;;  %s370_s0 = inlined_call_operand.vmem [shape: s8[32,128], index: 0, kind: input, shape index: {}]   ;;  %s371_s1 = inlined_call_operand.hbm [shape: bf16[128,128], index: 1, kind: input, shape index: {}]   ;;  %s372_s2 = inlined_call_operand.vmem [shape: f32[32,1], index: 2, kind: input, shape index: {}]   ;;  %s373_s3 = inlined_call_operand.hbm [shape: f32[32,128], index: 3, kind: output, shape index: {}]  }
   0x1   :  { %9 = vsyncpa [#allocation4], 0  ;;  %s322_s12 = smov [#allocation2]  }
   0x2   :  { %s17_s13 = sshll.u32 %s322_s12, 4  ;;  %s18_s13 = int_to_ptr.vmem [resolvable:$true] %s17_s13 }
   0x3   :  { %s286_s14 = scalar_lea.vmem %s18_s13, 1024  ;;  %p291_p1 = scmp.lt.s32.totalorder %s18_s13, %s18_s13 }
   0x4   :  { %p287_p0 = scmp.ne.s32.totalorder %s18_s13, %s286_s14  ;;  %p292_p2 = scmp.lt.s32.totalorder %s286_s14, %s286_s14 }
   0x6   :  { %p293_p3 = por %p292_p2, %p291_p1 }
   0x8   :  { %p294_p4 = pnand %p293_p3, %p287_p0 }
   0xa   :  { %297 = shalt.err (!%p294_p4)
}
   0xb   :  { %s323_s15 = smov 64   ;;  %s324_s16 = smov 4  }
   0xc   :  { %23 = dma.hbm_to_vmem [thread:$0]  %s371_s1, 1024, %s18_s13, [#allocation3], %s323_s15, %s323_s15, %s324_s16  }
   0xd   :  { %318 = dma.done.wait [#allocation3], 1024  }
   0xe   :  { %319 = vsyncadd [#allocation3], 4294966272  ;;  %v325_v0 = vmov 0   ;;  %v270_v1 = vld [vmem:[#allocation2 + $0x38] sm:$0xff]   ;;  %v271_v2 = vld [vmem:[#allocation2 + $0x30] sm:$0xff]  }
   0xf   :  { %269 = vset.pattern.permute.xlu1 %v325_v0  ;;  %268 = vset.pattern.permute.xlu0 %v325_v0  ;;  %v272_v3 = vld [vmem:[#allocation2 + $0x28] sm:$0xff]   ;;  %v273_v4 = vld [vmem:[#allocation2 + $0x20] sm:$0xff]   ;;  %v175_v6 = vld [vmem:[%s372_s2 + $0x10] sm:$0xff] }
  0x10   :  { %240 = vmatprep.subr.bf16.mxu0 %v270_v1  ;;  %v38_v5 = vld [vmem:[%s370_s0] sm:$0xff]  ;;  %189 = vperm.xlu1 %269, %v175_v6   ;;  %v176_v9 = vld [vmem:[%s372_s2 + $0x18] sm:$0xff]  ;;  %v174_v10 = vld [vmem:[%s372_s2 + $0x8] sm:$0xff]  ;;  %s326_s0 = smov [#allocation5]  }
  0x11   :  { %241 = vmatpush3.bf16.msra.mxu0 %v270_v1  ;;  %v173_v7 = vld [vmem:[%s372_s2] sm:$0xff]  ;;  %v39_v8 = vunpack.c.l.s8.bf16 %v38_v5  ;;  %v274_v11 = vld [vmem:[#allocation2 + $0x18] sm:$0xff]   ;;  %v275_v12 = vld [vmem:[#allocation2 + $0x10] sm:$0xff]   ;;  %v40_v15 = vunpack.c.h.s8.bf16 %v38_v5  ;;  %s210_s2 = sshll.u32 %s326_s0, 4  ;;  %s211_s2 = int_to_ptr.vmem [resolvable:$true] %s210_s2 }
  0x12   :  { %242 = vmatprep.subr.bf16.mxu0 %v271_v2  ;;  %179 = vperm.xlu0 %268, %v173_v7   ;;  %v276_v13 = vld [vmem:[#allocation2 + $0x8] sm:$0xff]   ;;  %v277_v14 = vld [vmem:[#allocation2] sm:$0xff]   ;;  %s298_s28 = scalar_lea.vmem %s211_s2, 512  ;;  %p303_p6 = scmp.lt.s32.totalorder %s211_s2, %s211_s2 }
  0x13   :  { %256 = vmatprep.mubr.bf16.mxu0 %v39_v8  ;;  %p299_p5 = scmp.ne.s32.totalorder %s211_s2, %s298_s28  ;;  %p304_p7 = scmp.lt.s32.totalorder %s298_s28, %s298_s28 }
  0x14   :  { %194 = vperm.xlu1 %269, %v176_v9  }
  0x15   :  { %243 = vmatpush3.bf16.msra.mxu0 %v271_v2  ;;  %p305_p8 = por %p304_p7, %p303_p6 }
  0x16   :  { %244 = vmatprep.subr.bf16.mxu0 %v272_v3  ;;  %184 = vperm.xlu0 %268, %v174_v10  }
  0x17   :  { %p306_p9 = pnand %p305_p8, %p299_p5 }
  0x19   :  { %245 = vmatpush3.bf16.msra.mxu0 %v272_v3 }
  0x1a   :  { %246 = vmatprep.subr.bf16.mxu0 %v273_v4 }
  0x1d   :  { %247 = vmatpush3.bf16.msra.mxu0 %v273_v4 }
  0x1e   :  { %248 = vmatprep.subr.bf16.mxu0 %v274_v11 }
  0x21   :  { %249 = vmatpush3.bf16.msra.mxu0 %v274_v11 }
  0x22   :  { %250 = vmatprep.subr.bf16.mxu0 %v275_v12 }
  0x25   :  { %251 = vmatpush3.bf16.msra.mxu0 %v275_v12 }
  0x26   :  { %252 = vmatprep.subr.bf16.mxu0 %v276_v13 }
  0x29   :  { %253 = vmatpush3.bf16.msra.mxu0 %v276_v13 }
  0x2a   :  { %254 = vmatprep.subr.bf16.mxu0 %v277_v14 }
  0x2d   :  { %255 = vmatpush3.bf16.msra.mxu0 %v277_v14 }
  0x30   :  { %257 = vmatmul.mubr.bf16.vlgmr.msra.gmra.mxu0 %v40_v15 }
  0x8b   :  { %v190_v17 = vpop.permute.xlu1 %189 }
  0x8d   :  { %v180_v19 = vpop.permute.xlu0 %179 }
  0x8f   :  { %v195_v24 = vpop.permute.xlu1 %194 }
  0x91   :  { %v185_v26 = vpop.permute.xlu0 %184 }
  0xf0   :  { %v258_v16 = vpop.f32.mrf.mxu0 }
  0xf1   :  { %v199_v20 = vmul.f32 %v258_v16, %v190_v17 }
  0xf2   :  { %v143_v18 = vpop.f32.mrf.mxu0 }
  0xf3   :  { %203 = vst [vmem:[#allocation5 + $0x10] sm:$0xff] %v199_v20  ;;  %v197_v22 = vmul.f32 %v180_v19, %v143_v18 }
  0xf4   :  { %v259_v21 = vpop.f32.mrf.mxu0 }
  0xf5   :  { %201 = vst [vmem:[#allocation5] sm:$0xff] %v197_v22  ;;  %v200_v25 = vmul.f32 %v259_v21, %v195_v24 }
  0xf6   :  { %v146_v23 = vpop.f32.mrf.mxu0 }
  0xf7   :  { %204 = vst [vmem:[#allocation5 + $0x18] sm:$0xff] %v200_v25  ;;  %v198_v27 = vmul.f32 %v185_v26, %v146_v23 }
  0xf9   :  { %202 = vst [vmem:[#allocation5 + $0x8] sm:$0xff] %v198_v27 }
  0xfa   :  { %309 = shalt.err (!%p306_p9)
}
  0xfb   :  { %s327_s29 = smov 128   ;;  %s328_s30 = smov 8  }
  0xfc   :  { %216 = dma.vmem_to_hbm [thread:$0]  %s211_s2, 512, %s373_s3, [#allocation4], %s327_s29, %s327_s29, %s328_s30  }
  0xfd   :  { %320 = dma.done.wait [#allocation4], 512  }
  0xfe   :  { %321 = vsyncadd [#allocation4], 4294966784 }
  0xff   :  { %220 = vsyncpa [#allocation3], 1 }
 0x100   :  { %221 = vsyncpa [#allocation4], 1 }

</bundles_post_ra>
